<compile_context>
chip_gen: v6e
topology: v6e:2x2x1
jax: 0.10.0
libtpu: 0.0.40
codegen_flags: <defaults>
</compile_context>

<pallas_src>
import functools

import jax
import jax.numpy as jnp
from jax.experimental import pallas as pl
from jax.experimental.pallas import tpu as pltpu

PAD = 128  # lane padding for features / weights / outputs (MXU + lane-dense stores)


def gat_conv_kernel(x_ref, wcat_ref, adj_ref, bias_ref, out_ref,
                    *, heads, out_ch, negative_slope, apply_relu):
    hc = heads * out_ch
    tile = out_ref.shape[0]
    start = pl.multiple_of(pl.program_id(0) * tile, tile)

    # --- Full-graph projection: one MXU pass gives xp, a_src (K = 128 only, so
    # the per-tile recompute is negligible next to the attention-apply matmuls).
    xp_all = jnp.dot(x_ref[...], wcat_ref[...],
                     preferred_element_type=jnp.float32)           # (N, PAD) f32
    xp_hc = xp_all[:, :hc].astype(jnp.bfloat16)                    # (N, H*C) bf16
    a_src_t = xp_all[:, hc:hc + heads].T                           # (H, N)  one XLU op

    # --- Destination-tile logits via a second tiny MXU pass on the sliced rows
    # (no duplicated x input, no buffer concatenation).
    x_dst = x_ref[pl.ds(start, tile), :]                           # (T, PAD) bf16
    xp_dst = jnp.dot(x_dst, wcat_ref[...],
                     preferred_element_type=jnp.float32)           # (T, PAD) f32
    a_dst = xp_dst[:, hc + heads:hc + 2 * heads]                   # (T, H)

    # --- Additive mask built once per tile from the int8 adjacency.
    mbias = jnp.where(adj_ref[...].astype(jnp.float32) > jnp.float32(0.5),
                      jnp.float32(0.0), jnp.float32(-1e30))        # (T, N) f32

    # --- Per-head masked softmax + attention apply (VPU/EUP + one MXU matmul
    # per head; H*C <= 128 so each matmul is a single 128-column MXU pass).
    acc = jnp.zeros((tile, out_ch), jnp.float32)
    for h in range(heads):                                          # heads small -> unrolled
        raw = a_dst[:, h:h + 1] + a_src_t[h:h + 1, :]               # (T, N)
        e = jnp.where(raw > 0.0, raw, negative_slope * raw) + mbias
        m = jnp.max(e, axis=-1, keepdims=True)
        p = jnp.exp(e - m)                                          # masked entries -> 0
        s = jnp.sum(p, axis=-1, keepdims=True)
        inv = pl.reciprocal(s * jnp.float32(heads), approx=True)    # folds mean over heads
        alpha = (p * inv).astype(jnp.bfloat16)                      # (T, N) bf16
        ph = jnp.dot(alpha, xp_hc, preferred_element_type=jnp.float32)  # (T, H*C) f32
        acc = acc + ph[:, h * out_ch:(h + 1) * out_ch]              # keep this head's block

    # Lane-dense (T, 128) output; padded lanes stay zero (bias is zero there too).
    out = jnp.concatenate(
        [acc, jnp.zeros((tile, PAD - out_ch), jnp.float32)], axis=-1)
    out = out + bias_ref[...]
    if apply_relu:
        out = jnp.maximum(out, 0.0)
    out_ref[...] = out.astype(out_ref.dtype)


def _pick_tile(n):
    """Largest dst-row tile (multiple of 32, capped at 512) dividing n, else full."""
    for t in (512, 256, 128, 64, 32):
        if n % t == 0:
            return t
    return n  # full array -> single block (always a legal block shape)


def gat_conv(x_pad_bf16, adj_i8, layer, *, apply_relu, out_dtype):
    n = x_pad_bf16.shape[0]
    heads, out_ch = layer["heads"], layer["out_ch"]
    tile = _pick_tile(n)
    kernel = functools.partial(
        gat_conv_kernel, heads=heads, out_ch=out_ch,
        negative_slope=0.2, apply_relu=apply_relu)
    return pl.pallas_call(
        kernel,
        out_shape=jax.ShapeDtypeStruct((n, PAD), out_dtype),
        grid=(n // tile,),
        in_specs=[
            pl.BlockSpec((n, PAD), lambda i: (0, 0)),     # x, full graph (resident)
            pl.BlockSpec((PAD, PAD), lambda i: (0, 0)),   # fused Wcat (resident)
            pl.BlockSpec((tile, n), lambda i: (i, 0)),    # int8 adjacency, dst-row tile
            pl.BlockSpec((1, PAD), lambda i: (0, 0)),     # bias (resident)
        ],
        out_specs=pl.BlockSpec((tile, PAD), lambda i: (i, 0)),
        compiler_params=pltpu.CompilerParams(
            dimension_semantics=("parallel",),            # shard dst tiles across TCs
            vmem_limit_bytes=64 * 1024 * 1024),
    )(x_pad_bf16, layer["wcat"], adj_i8, layer["bias"])


def prepare_layer(p):
    """Fold att_src/att_dst into the projection: Wcat = [W | W@src | W@dst], padded."""
    W, att_src, att_dst, bias = p["W"], p["att_src"], p["att_dst"], p["bias"]
    in_ch = W.shape[0]
    heads, out_ch = att_src.shape
    hc = heads * out_ch
    assert in_ch <= PAD and hc + 2 * heads <= PAD and out_ch <= PAD
    W3 = W.reshape(in_ch, heads, out_ch)
    wsrc = jnp.einsum("fhc,hc->fh", W3, att_src)          # (Fin, H)
    wdst = jnp.einsum("fhc,hc->fh", W3, att_dst)          # (Fin, H)
    wcat = jnp.concatenate([W, wsrc, wdst], axis=1)       # (Fin, H*C + 2H)
    wcat_pad = jnp.zeros((PAD, PAD), jnp.float32).at[:in_ch, :hc + 2 * heads].set(wcat)
    bias_pad = jnp.zeros((1, PAD), jnp.float32).at[:, :out_ch].set(bias.reshape(1, -1))
    return dict(wcat=wcat_pad.astype(jnp.bfloat16), bias=bias_pad,
                heads=heads, out_ch=out_ch)


def parameterized_gat_forward(x, adj_i8, layers):
    # Mirrors ParameterizedGAT.forward: relu (+ identity dropout) between layers,
    # plain conv at the end. Hidden activations stay lane-dense (N, 128) bf16.
    n, f = x.shape
    xp = jnp.zeros((n, PAD), jnp.float32).at[:, :f].set(x).astype(jnp.bfloat16)
    for layer in layers[:-1]:
        xp = gat_conv(xp, adj_i8, layer, apply_relu=True, out_dtype=jnp.bfloat16)
        # TODO(synk): stochastic dropout (training=True) would need pltpu.prng_* in-kernel;
        # F.dropout is identity at inference so it is omitted here.
    out = gat_conv(xp, adj_i8, layers[-1], apply_relu=False, out_dtype=jnp.float32)
    return out[:, :layers[-1]["out_ch"]]


def init_gat_layer(key, in_ch, out_ch, heads):
    k1, k2, k3 = jax.random.split(key, 3)
    scale = 1.0 / jnp.sqrt(jnp.float32(in_ch))
    return dict(
        W=jax.random.normal(k1, (in_ch, heads * out_ch), jnp.float32) * scale,
        att_src=jax.random.normal(k2, (heads, out_ch), jnp.float32) * 0.1,
        att_dst=jax.random.normal(k3, (heads, out_ch), jnp.float32) * 0.1,
        bias=jnp.zeros((1, out_ch), jnp.float32),
    )


if __name__ == "__main__":
    # Small, module-consistent sizes.
    N_NODES, N_FEATURES, N_HIDDEN, N_CLASSES = 16, 8, 16, 4
    N_LAYERS, N_HEADS = 2, 4

    key = jax.random.PRNGKey(0)
    kx, kp = jax.random.split(key)
    x = jax.random.normal(kx, (N_NODES, N_FEATURES), jnp.float32)

    # Deterministic edge_index (ring both ways + a skip connection), densified to
    # adj[dst, src] with self-loops (GATConv default), stored as int8.
    idx = jnp.arange(N_NODES)
    edges_src = jnp.concatenate([idx, (idx + 1) % N_NODES, idx])
    edges_dst = jnp.concatenate([(idx + 1) % N_NODES, idx, (idx + 5) % N_NODES])
    adj = jnp.zeros((N_NODES, N_NODES), jnp.float32).at[edges_dst, edges_src].set(1.0)
    adj = jnp.maximum(adj, jnp.eye(N_NODES, dtype=jnp.float32))
    adj_i8 = (adj > 0.0).astype(jnp.int8)

    # Build layer parameters like ParameterizedGAT.__init__ (n_layers=2):
    # GATConv(n_features -> n_hidden, heads), GATConv(n_hidden -> n_classes, heads).
    keys = jax.random.split(kp, N_LAYERS)
    raw_layers, in_ch = [], N_FEATURES
    for li in range(N_LAYERS):
        out_ch = N_CLASSES if li == N_LAYERS - 1 else N_HIDDEN
        raw_layers.append(init_gat_layer(keys[li], in_ch, out_ch, N_HEADS))
        in_ch = out_ch
    layers = [prepare_layer(p) for p in raw_layers]

    out = parameterized_gat_forward(x, adj_i8, layers)
    jax.block_until_ready(out)
    assert out.shape == (N_NODES, N_CLASSES)
    print("KERNEL_OK")
</pallas_src>

<mosaic_0001>
module attributes {stable_mosaic.version = 11 : i64} {
  func.func @gat_conv_kernel(%arg0: i32, %arg1: memref<16x128xbf16, #tpu.memory_space<vmem>>, %arg2: memref<128x128xbf16, #tpu.memory_space<vmem>>, %arg3: memref<16x16xi8, #tpu.memory_space<vmem>>, %arg4: memref<1x128xf32, #tpu.memory_space<vmem>>, %arg5: memref<16x128xbf16, #tpu.memory_space<vmem>>) attributes {dimension_semantics = [#tpu.dimension_semantics<parallel>], iteration_bounds = array<i64: 1>, scalar_prefetch = 0 : i64, scratch_operands = 0 : i64, tpu.core_type = #tpu.core_type<tc>, window_params = [{pipeline_mode = #tpu.pipeline_mode<synchronous>, transform_indices = @transform_0, window_bounds = array<i64: 16, 128>}, {pipeline_mode = #tpu.pipeline_mode<synchronous>, transform_indices = @transform_1, window_bounds = array<i64: 128, 128>}, {transform_indices = @transform_2, window_bounds = array<i64: 16, 16>}, {pipeline_mode = #tpu.pipeline_mode<synchronous>, transform_indices = @transform_3, window_bounds = array<i64: 1, 128>}, {transform_indices = @transform_4, window_bounds = array<i64: 16, 128>}]} {
    %c16_i32 = arith.constant 16 : i32
    %0 = arith.muli %arg0, %c16_i32 : i32
    %1 = tpu.assume_multiple %0, 16 : i32
    %c0 = arith.constant 0 : index
    %c0_0 = arith.constant 0 : index
    %2 = vector.load %arg1[%c0, %c0_0] : memref<16x128xbf16, #tpu.memory_space<vmem>>, vector<16x128xbf16>
    %c0_1 = arith.constant 0 : index
    %c0_2 = arith.constant 0 : index
    %3 = vector.load %arg2[%c0_1, %c0_2] : memref<128x128xbf16, #tpu.memory_space<vmem>>, vector<128x128xbf16>
    %cst = arith.constant dense<0.000000e+00> : vector<16x128xf32>
    %4 = tpu.matmul %2, %3, %cst {dimension_numbers = #tpu.dot_dimension_numbers<[1], [0], [0], [1], [0, 0, 1, 1], [], []>} : vector<16x128xbf16>, vector<128x128xbf16>, vector<16x128xf32> -> vector<16x128xf32>
    %5 = vector.extract_strided_slice %4 {offsets = [0, 0], sizes = [16, 64], strides = [1, 1]} : vector<16x128xf32> to vector<16x64xf32>
    %6 = arith.truncf %5 : vector<16x64xf32> to vector<16x64xbf16>
    %7 = vector.extract_strided_slice %4 {offsets = [0, 64], sizes = [16, 4], strides = [1, 1]} : vector<16x128xf32> to vector<16x4xf32>
    %8 = tpu.transpose %7, [1, 0] : vector<16x4xf32> -> vector<4x16xf32>
    %9 = arith.index_cast %1 : i32 to index
    %c0_3 = arith.constant 0 : index
    %10 = vector.load %arg1[%9, %c0_3] : memref<16x128xbf16, #tpu.memory_space<vmem>>, vector<16x128xbf16>
    %c0_4 = arith.constant 0 : index
    %c0_5 = arith.constant 0 : index
    %11 = vector.load %arg2[%c0_4, %c0_5] : memref<128x128xbf16, #tpu.memory_space<vmem>>, vector<128x128xbf16>
    %cst_6 = arith.constant dense<0.000000e+00> : vector<16x128xf32>
    %12 = tpu.matmul %10, %11, %cst_6 {dimension_numbers = #tpu.dot_dimension_numbers<[1], [0], [0], [1], [0, 0, 1, 1], [], []>} : vector<16x128xbf16>, vector<128x128xbf16>, vector<16x128xf32> -> vector<16x128xf32>
    %13 = vector.extract_strided_slice %12 {offsets = [0, 68], sizes = [16, 4], strides = [1, 1]} : vector<16x128xf32> to vector<16x4xf32>
    %c0_7 = arith.constant 0 : index
    %c0_8 = arith.constant 0 : index
    %14 = vector.load %arg3[%c0_7, %c0_8] : memref<16x16xi8, #tpu.memory_space<vmem>>, vector<16x16xi8>
    %15 = arith.sitofp %14 : vector<16x16xi8> to vector<16x16xf32>
    %cst_9 = arith.constant 5.000000e-01 : f32
    %16 = vector.broadcast %cst_9 : f32 to vector<16x16xf32>
    %17 = arith.cmpf ogt, %15, %16 : vector<16x16xf32>
    %cst_10 = arith.constant 0.000000e+00 : f32
    %cst_11 = arith.constant -1.000000e+30 : f32
    %18 = vector.broadcast %cst_10 : f32 to vector<16x16xf32>
    %19 = vector.broadcast %cst_11 : f32 to vector<16x16xf32>
    %20 = arith.select %17, %18, %19 : vector<16x16xi1>, vector<16x16xf32>
    %cst_12 = arith.constant 0.000000e+00 : f32
    %21 = vector.broadcast %cst_12 : f32 to vector<16x16xf32>
    %22 = vector.extract_strided_slice %13 {offsets = [0, 0], sizes = [16, 1], strides = [1, 1]} : vector<16x4xf32> to vector<16x1xf32>
    %23 = vector.extract_strided_slice %8 {offsets = [0, 0], sizes = [1, 16], strides = [1, 1]} : vector<4x16xf32> to vector<1x16xf32>
    %24 = vector.broadcast %22 : vector<16x1xf32> to vector<16x16xf32>
    %25 = vector.broadcast %23 : vector<1x16xf32> to vector<16x16xf32>
    %26 = arith.addf %24, %25 : vector<16x16xf32>
    %cst_13 = arith.constant 0.000000e+00 : f32
    %27 = vector.broadcast %cst_13 : f32 to vector<16x16xf32>
    %28 = arith.cmpf ogt, %26, %27 : vector<16x16xf32>
    %cst_14 = arith.constant 2.000000e-01 : f32
    %29 = vector.broadcast %cst_14 : f32 to vector<16x16xf32>
    %30 = arith.mulf %29, %26 : vector<16x16xf32>
    %31 = arith.select %28, %26, %30 : vector<16x16xi1>, vector<16x16xf32>
    %32 = arith.addf %31, %20 : vector<16x16xf32>
    %cst_15 = arith.constant dense<0xFF800000> : vector<16xf32>
    %33 = vector.multi_reduction <maximumf>, %32, %cst_15 [1] : vector<16x16xf32> to vector<16xf32>
    %34 = vector.shape_cast %33 : vector<16xf32> to vector<16x1xf32>
    %35 = vector.broadcast %34 : vector<16x1xf32> to vector<16x16xf32>
    %36 = arith.subf %32, %35 : vector<16x16xf32>
    %37 = math.exp %36 : vector<16x16xf32>
    %cst_16 = arith.constant dense<0.000000e+00> : vector<16xf32>
    %38 = vector.multi_reduction <add>, %37, %cst_16 [1] : vector<16x16xf32> to vector<16xf32>
    %39 = vector.shape_cast %38 : vector<16xf32> to vector<16x1xf32>
    %cst_17 = arith.constant 4.000000e+00 : f32
    %40 = vector.broadcast %cst_17 : f32 to vector<16x1xf32>
    %41 = arith.mulf %39, %40 : vector<16x1xf32>
    %42 = tpu.reciprocal %41 {approx = true} : vector<16x1xf32> -> vector<16x1xf32>
    %43 = vector.broadcast %42 : vector<16x1xf32> to vector<16x16xf32>
    %44 = arith.mulf %37, %43 : vector<16x16xf32>
    %45 = arith.truncf %44 : vector<16x16xf32> to vector<16x16xbf16>
    %cst_18 = arith.constant dense<0.000000e+00> : vector<16x64xf32>
    %46 = tpu.matmul %45, %6, %cst_18 {dimension_numbers = #tpu.dot_dimension_numbers<[1], [0], [0], [1], [0, 0, 1, 1], [], []>} : vector<16x16xbf16>, vector<16x64xbf16>, vector<16x64xf32> -> vector<16x64xf32>
    %47 = vector.extract_strided_slice %46 {offsets = [0, 0], sizes = [16, 16], strides = [1, 1]} : vector<16x64xf32> to vector<16x16xf32>
    %48 = arith.addf %21, %47 : vector<16x16xf32>
    %49 = vector.extract_strided_slice %13 {offsets = [0, 1], sizes = [16, 1], strides = [1, 1]} : vector<16x4xf32> to vector<16x1xf32>
    %50 = vector.extract_strided_slice %8 {offsets = [1, 0], sizes = [1, 16], strides = [1, 1]} : vector<4x16xf32> to vector<1x16xf32>
    %51 = vector.broadcast %49 : vector<16x1xf32> to vector<16x16xf32>
    %52 = vector.broadcast %50 : vector<1x16xf32> to vector<16x16xf32>
    %53 = arith.addf %51, %52 : vector<16x16xf32>
    %cst_19 = arith.constant 0.000000e+00 : f32
    %54 = vector.broadcast %cst_19 : f32 to vector<16x16xf32>
    %55 = arith.cmpf ogt, %53, %54 : vector<16x16xf32>
    %cst_20 = arith.constant 2.000000e-01 : f32
    %56 = vector.broadcast %cst_20 : f32 to vector<16x16xf32>
    %57 = arith.mulf %56, %53 : vector<16x16xf32>
    %58 = arith.select %55, %53, %57 : vector<16x16xi1>, vector<16x16xf32>
    %59 = arith.addf %58, %20 : vector<16x16xf32>
    %cst_21 = arith.constant dense<0xFF800000> : vector<16xf32>
    %60 = vector.multi_reduction <maximumf>, %59, %cst_21 [1] : vector<16x16xf32> to vector<16xf32>
    %61 = vector.shape_cast %60 : vector<16xf32> to vector<16x1xf32>
    %62 = vector.broadcast %61 : vector<16x1xf32> to vector<16x16xf32>
    %63 = arith.subf %59, %62 : vector<16x16xf32>
    %64 = math.exp %63 : vector<16x16xf32>
    %cst_22 = arith.constant dense<0.000000e+00> : vector<16xf32>
    %65 = vector.multi_reduction <add>, %64, %cst_22 [1] : vector<16x16xf32> to vector<16xf32>
    %66 = vector.shape_cast %65 : vector<16xf32> to vector<16x1xf32>
    %cst_23 = arith.constant 4.000000e+00 : f32
    %67 = vector.broadcast %cst_23 : f32 to vector<16x1xf32>
    %68 = arith.mulf %66, %67 : vector<16x1xf32>
    %69 = tpu.reciprocal %68 {approx = true} : vector<16x1xf32> -> vector<16x1xf32>
    %70 = vector.broadcast %69 : vector<16x1xf32> to vector<16x16xf32>
    %71 = arith.mulf %64, %70 : vector<16x16xf32>
    %72 = arith.truncf %71 : vector<16x16xf32> to vector<16x16xbf16>
    %cst_24 = arith.constant dense<0.000000e+00> : vector<16x64xf32>
    %73 = tpu.matmul %72, %6, %cst_24 {dimension_numbers = #tpu.dot_dimension_numbers<[1], [0], [0], [1], [0, 0, 1, 1], [], []>} : vector<16x16xbf16>, vector<16x64xbf16>, vector<16x64xf32> -> vector<16x64xf32>
    %74 = vector.extract_strided_slice %73 {offsets = [0, 16], sizes = [16, 16], strides = [1, 1]} : vector<16x64xf32> to vector<16x16xf32>
    %75 = arith.addf %48, %74 : vector<16x16xf32>
    %76 = vector.extract_strided_slice %13 {offsets = [0, 2], sizes = [16, 1], strides = [1, 1]} : vector<16x4xf32> to vector<16x1xf32>
    %77 = vector.extract_strided_slice %8 {offsets = [2, 0], sizes = [1, 16], strides = [1, 1]} : vector<4x16xf32> to vector<1x16xf32>
    %78 = vector.broadcast %76 : vector<16x1xf32> to vector<16x16xf32>
    %79 = vector.broadcast %77 : vector<1x16xf32> to vector<16x16xf32>
    %80 = arith.addf %78, %79 : vector<16x16xf32>
    %cst_25 = arith.constant 0.000000e+00 : f32
    %81 = vector.broadcast %cst_25 : f32 to vector<16x16xf32>
    %82 = arith.cmpf ogt, %80, %81 : vector<16x16xf32>
    %cst_26 = arith.constant 2.000000e-01 : f32
    %83 = vector.broadcast %cst_26 : f32 to vector<16x16xf32>
    %84 = arith.mulf %83, %80 : vector<16x16xf32>
    %85 = arith.select %82, %80, %84 : vector<16x16xi1>, vector<16x16xf32>
    %86 = arith.addf %85, %20 : vector<16x16xf32>
    %cst_27 = arith.constant dense<0xFF800000> : vector<16xf32>
    %87 = vector.multi_reduction <maximumf>, %86, %cst_27 [1] : vector<16x16xf32> to vector<16xf32>
    %88 = vector.shape_cast %87 : vector<16xf32> to vector<16x1xf32>
    %89 = vector.broadcast %88 : vector<16x1xf32> to vector<16x16xf32>
    %90 = arith.subf %86, %89 : vector<16x16xf32>
    %91 = math.exp %90 : vector<16x16xf32>
    %cst_28 = arith.constant dense<0.000000e+00> : vector<16xf32>
    %92 = vector.multi_reduction <add>, %91, %cst_28 [1] : vector<16x16xf32> to vector<16xf32>
    %93 = vector.shape_cast %92 : vector<16xf32> to vector<16x1xf32>
    %cst_29 = arith.constant 4.000000e+00 : f32
    %94 = vector.broadcast %cst_29 : f32 to vector<16x1xf32>
    %95 = arith.mulf %93, %94 : vector<16x1xf32>
    %96 = tpu.reciprocal %95 {approx = true} : vector<16x1xf32> -> vector<16x1xf32>
    %97 = vector.broadcast %96 : vector<16x1xf32> to vector<16x16xf32>
    %98 = arith.mulf %91, %97 : vector<16x16xf32>
    %99 = arith.truncf %98 : vector<16x16xf32> to vector<16x16xbf16>
    %cst_30 = arith.constant dense<0.000000e+00> : vector<16x64xf32>
    %100 = tpu.matmul %99, %6, %cst_30 {dimension_numbers = #tpu.dot_dimension_numbers<[1], [0], [0], [1], [0, 0, 1, 1], [], []>} : vector<16x16xbf16>, vector<16x64xbf16>, vector<16x64xf32> -> vector<16x64xf32>
    %101 = vector.extract_strided_slice %100 {offsets = [0, 32], sizes = [16, 16], strides = [1, 1]} : vector<16x64xf32> to vector<16x16xf32>
    %102 = arith.addf %75, %101 : vector<16x16xf32>
    %103 = vector.extract_strided_slice %13 {offsets = [0, 3], sizes = [16, 1], strides = [1, 1]} : vector<16x4xf32> to vector<16x1xf32>
    %104 = vector.extract_strided_slice %8 {offsets = [3, 0], sizes = [1, 16], strides = [1, 1]} : vector<4x16xf32> to vector<1x16xf32>
    %105 = vector.broadcast %103 : vector<16x1xf32> to vector<16x16xf32>
    %106 = vector.broadcast %104 : vector<1x16xf32> to vector<16x16xf32>
    %107 = arith.addf %105, %106 : vector<16x16xf32>
    %cst_31 = arith.constant 0.000000e+00 : f32
    %108 = vector.broadcast %cst_31 : f32 to vector<16x16xf32>
    %109 = arith.cmpf ogt, %107, %108 : vector<16x16xf32>
    %cst_32 = arith.constant 2.000000e-01 : f32
    %110 = vector.broadcast %cst_32 : f32 to vector<16x16xf32>
    %111 = arith.mulf %110, %107 : vector<16x16xf32>
    %112 = arith.select %109, %107, %111 : vector<16x16xi1>, vector<16x16xf32>
    %113 = arith.addf %112, %20 : vector<16x16xf32>
    %cst_33 = arith.constant dense<0xFF800000> : vector<16xf32>
    %114 = vector.multi_reduction <maximumf>, %113, %cst_33 [1] : vector<16x16xf32> to vector<16xf32>
    %115 = vector.shape_cast %114 : vector<16xf32> to vector<16x1xf32>
    %116 = vector.broadcast %115 : vector<16x1xf32> to vector<16x16xf32>
    %117 = arith.subf %113, %116 : vector<16x16xf32>
    %118 = math.exp %117 : vector<16x16xf32>
    %cst_34 = arith.constant dense<0.000000e+00> : vector<16xf32>
    %119 = vector.multi_reduction <add>, %118, %cst_34 [1] : vector<16x16xf32> to vector<16xf32>
    %120 = vector.shape_cast %119 : vector<16xf32> to vector<16x1xf32>
    %cst_35 = arith.constant 4.000000e+00 : f32
    %121 = vector.broadcast %cst_35 : f32 to vector<16x1xf32>
    %122 = arith.mulf %120, %121 : vector<16x1xf32>
    %123 = tpu.reciprocal %122 {approx = true} : vector<16x1xf32> -> vector<16x1xf32>
    %124 = vector.broadcast %123 : vector<16x1xf32> to vector<16x16xf32>
    %125 = arith.mulf %118, %124 : vector<16x16xf32>
    %126 = arith.truncf %125 : vector<16x16xf32> to vector<16x16xbf16>
    %cst_36 = arith.constant dense<0.000000e+00> : vector<16x64xf32>
    %127 = tpu.matmul %126, %6, %cst_36 {dimension_numbers = #tpu.dot_dimension_numbers<[1], [0], [0], [1], [0, 0, 1, 1], [], []>} : vector<16x16xbf16>, vector<16x64xbf16>, vector<16x64xf32> -> vector<16x64xf32>
    %128 = vector.extract_strided_slice %127 {offsets = [0, 48], sizes = [16, 16], strides = [1, 1]} : vector<16x64xf32> to vector<16x16xf32>
    %129 = arith.addf %102, %128 : vector<16x16xf32>
    %cst_37 = arith.constant 0.000000e+00 : f32
    %130 = vector.broadcast %cst_37 : f32 to vector<16x112xf32>
    %131 = tpu.concatenate %129, %130 in 1 : vector<16x16xf32>, vector<16x112xf32> -> vector<16x128xf32>
    %c0_38 = arith.constant 0 : index
    %c0_39 = arith.constant 0 : index
    %132 = vector.load %arg4[%c0_38, %c0_39] : memref<1x128xf32, #tpu.memory_space<vmem>>, vector<1x128xf32>
    %133 = vector.broadcast %132 : vector<1x128xf32> to vector<16x128xf32>
    %134 = arith.addf %131, %133 : vector<16x128xf32>
    %cst_40 = arith.constant 0.000000e+00 : f32
    %135 = vector.broadcast %cst_40 : f32 to vector<16x128xf32>
    %136 = arith.maximumf %134, %135 : vector<16x128xf32>
    %137 = arith.truncf %136 : vector<16x128xf32> to vector<16x128xbf16>
    %c0_41 = arith.constant 0 : index
    %c0_42 = arith.constant 0 : index
    %138 = vector.load %arg5[%c0_41, %c0_42] : memref<16x128xbf16, #tpu.memory_space<vmem>>, vector<16x128xbf16>
    tpu.vector_store %arg5[%c0_41, %c0_42], %137 {strides = array<i32>} : memref<16x128xbf16, #tpu.memory_space<vmem>>, vector<16x128xbf16>,
    return
  }
  func.func @transform_0(%arg0: i32) -> (i32, i32) {
    %c0_i32 = arith.constant 0 : i32
    %c0_i32_0 = arith.constant 0 : i32
    %c0_i32_1 = arith.constant 0 : i32
    return %c0_i32, %c0_i32_0 : i32, i32
  }
  func.func @transform_1(%arg0: i32) -> (i32, i32) {
    %c0_i32 = arith.constant 0 : i32
    %c0_i32_0 = arith.constant 0 : i32
    %c0_i32_1 = arith.constant 0 : i32
    return %c0_i32, %c0_i32_0 : i32, i32
  }
  func.func @transform_2(%arg0: i32) -> (i32, i32) {
    %c0_i32 = arith.constant 0 : i32
    %c0_i32_0 = arith.constant 0 : i32
    return %arg0, %c0_i32 : i32, i32
  }
  func.func @transform_3(%arg0: i32) -> (i32, i32) {
    %c0_i32 = arith.constant 0 : i32
    %c0_i32_0 = arith.constant 0 : i32
    %c0_i32_1 = arith.constant 0 : i32
    return %c0_i32, %c0_i32_0 : i32, i32
  }
  func.func @transform_4(%arg0: i32) -> (i32, i32) {
    %c0_i32 = arith.constant 0 : i32
    %c0_i32_0 = arith.constant 0 : i32
    return %arg0, %c0_i32 : i32, i32
  }
}

</mosaic_0001>

<bundles_post_ra>
// kernel: tpu_custom_call.1
= control target key start
LH: loop header
LB: loop body
LE: loop exit
PB: predicated region body
PF: predicated region fallthrough
CT: control target
= control target key end

     0   :  { %9 = vsyncpa [#allocation3], 0  ;;  %s1121_s0 = inlined_call_operand.hbm [shape: bf16[16,128], index: 0, kind: input, shape index: {}]   ;;  %s1122_s1 = inlined_call_operand.hbm [shape: bf16[128,128], index: 1, kind: input, shape index: {}]   ;;  %s1123_s2 = inlined_call_operand.hbm [shape: s8[16,16], index: 2, kind: input, shape index: {}]   ;;  %s1124_s3 = inlined_call_operand.vmem [shape: f32[1,128], index: 3, kind: input, shape index: {}]   ;;  %s1125_s4 = inlined_call_operand.hbm [shape: bf16[16,128], index: 4, kind: output, shape index: {}]  }
   0x1   :  { %10 = vsyncpa [#allocation6], 0 }
   0x2   :  { %11 = vsyncpa [#allocation4], 0  ;;  %s992_s15 = smov [#allocation5]   ;;  %s993_s17 = smov [#allocation2]  }
   0x3   :  { %s29_s16 = sshll.u32 %s992_s15, 4  ;;  %s17_s18 = sshll.u32 %s993_s17, 4  ;;  %s30_s16 = int_to_ptr.vmem [resolvable:$true] %s29_s16  ;;  %s18_s18 = int_to_ptr.vmem [resolvable:$true] %s17_s18 }
   0x4   :  { %s914_s19 = scalar_lea.vmem %s30_s16, 1024  ;;  %p919_p1 = scmp.lt.s32.totalorder %s30_s16, %s30_s16 }
   0x5   :  { %p915_p0 = scmp.ne.s32.totalorder %s30_s16, %s914_s19  ;;  %p920_p2 = scmp.lt.s32.totalorder %s914_s19, %s914_s19 }
   0x7   :  { %p921_p3 = por %p920_p2, %p919_p1 }
   0x9   :  { %p922_p4 = pnand %p921_p3, %p915_p0 }
   0xb   :  { %925 = shalt.err (!%p922_p4)
}
   0xc   :  { %s994_s20 = smov 64   ;;  %s995_s21 = smov 4  }
   0xd   :  { %35 = dma.hbm_to_vmem [thread:$0]  %s1122_s1, 1024, %s30_s16, [#allocation6], %s994_s20, %s994_s20, %s995_s21  }
   0xe   :  { %s934_s24 = scalar_lea.vmem %s18_s18, 128  ;;  %p939_p6 = scmp.lt.s32.totalorder %s18_s18, %s18_s18 }
   0xf   :  { %p935_p5 = scmp.ne.s32.totalorder %s18_s18, %s934_s24  ;;  %p940_p7 = scmp.lt.s32.totalorder %s934_s24, %s934_s24 }
  0x11   :  { %p941_p8 = por %p940_p7, %p939_p6 }
  0x13   :  { %p942_p9 = pnand %p941_p8, %p935_p5 }
  0x15   :  { %945 = shalt.err (!%p942_p9)
}
  0x16   :  { %23 = dma.hbm_to_vmem [thread:$0]  %s1121_s0, 128, %s18_s18, [#allocation3], %s994_s20, %s994_s20, %s995_s21  }
  0x17   :  { %s996_s27 = smov [#allocation7]  }
  0x18   :  { %s41_s28 = sshll.u32 %s996_s27, 4  ;;  %s42_s28 = int_to_ptr.vmem [resolvable:$true] %s41_s28 }
  0x19   :  { %s954_s29 = scalar_lea.vmem %s42_s28, 64  ;;  %p959_p11 = scmp.lt.s32.totalorder %s42_s28, %s42_s28 }
  0x1a   :  { %p955_p10 = scmp.ne.s32.totalorder %s42_s28, %s954_s29  ;;  %p960_p12 = scmp.lt.s32.totalorder %s954_s29, %s954_s29 }
  0x1c   :  { %p961_p13 = por %p960_p12, %p959_p11 }
  0x1e   :  { %p962_p0 = pnand %p961_p13, %p955_p10 }
  0x20   :  { %965 = shalt.err (!%p962_p0)
}
  0x21   :  { %s997_s1 = smov 32   ;;  %s998_s30 = smov 2  }
  0x22   :  { %47 = dma.hbm_to_vmem [thread:$0]  %s1123_s2, 64, %s42_s28, [#allocation6], %s997_s1, %s997_s1, %s998_s30  }
  0x23   :  { %986 = dma.done.wait [#allocation3], 128  }
  0x24   :  { %987 = vsyncadd [#allocation3], 4294967168 }
  0x25   :  { %988 = dma.done.wait [#allocation6], 1088  }
  0x26   :  { %989 = vsyncadd [#allocation6], 4294966208  ;;  %v999_v0 = vmov 0.0   ;;  %vm1000_vm0 = vmmov 0   ;;  %v864_v1 = vld [vmem:[#allocation5 + $0x38] sm:$0xff]   ;;  %v865_v2 = vld [vmem:[#allocation5 + $0x30] sm:$0xff]   ;;  %v288_v27 = vlaneseq }
  0x27   :  { %774 = vmatprep.subr.bf16.mxu0 %v999_v0  ;;  %790 = vmatprep.mubr.msk.bf16.mxu0 %vm1000_vm0, %v999_v0  ;;  %v866_v3 = vld [vmem:[#allocation5 + $0x28] sm:$0xff]   ;;  %v867_v4 = vld [vmem:[#allocation5 + $0x20] sm:$0xff]   ;;  %v868_v5 = vld [vmem:[#allocation5 + $0x18] sm:$0xff]   ;;  %v1001_v11 = vmov 68   ;;  %v1002_v12 = vmov 69   ;;  %v1003_v20 = vmov 70  }
  0x28   :  { %794 = vmatprep.subr.bf16.mxu1 %v999_v0  ;;  %810 = vmatprep.mubr.msk.bf16.mxu1 %vm1000_vm0, %v999_v0  ;;  %v869_v6 = vld [vmem:[#allocation5 + $0x10] sm:$0xff]   ;;  %v870_v7 = vld [vmem:[#allocation5 + $0x8] sm:$0xff]   ;;  %v871_v8 = vld [vmem:[#allocation5] sm:$0xff]   ;;  %v1004_v23 = vmov 71   ;;  %v289_v31 = vshrl.u32 %v288_v27, 7  ;;  %vm302_vm5 = vcmask 130048  }
  0x29   :  { %775 = vmatpush3.bf16.msra.mxu0 %v864_v1  ;;  %795 = vmatpush3.bf16.msra.mxu1 %v864_v1  ;;  %v872_v9 = vld [vmem:[#allocation2] sm:$0xff]   ;;  %v745_v30 = vld [vmem:[#allocation7] sm:$0xf]   ;;  %v1005_v50 = vmov -1e+30   ;;  %s1006_s0 = smov 112  }
  0x2a   :  { %776 = vmatprep.subr.bf16.mxu0 %v999_v0  ;;  %796 = vmatprep.subr.bf16.mxu1 %v999_v0  ;;  %v873_v10 = vld [vmem:[#allocation2] sm:$0xff]   ;;  %v747_v32 = vunpack.c.1.s8 %v745_v30  ;;  %v746_v33 = vunpack.c.0.s8 %v745_v30  ;;  %v290_v36 = vsub.s32 0, %v289_v31  ;;  %v384_v37 = vsub.s32 1, %v289_v31  ;;  %s1007_s2 = smov 96   ;;  %s1008_s7 = smov 80  }
  0x2b   :  { %856 = vset.pattern.permute.xlu1 %v1001_v11  ;;  %857 = vset.pattern.permute.xlu0 %v1002_v12  ;;  %v485_v40 = vsub.s32 2, %v289_v31  ;;  %v586_v55 = vsub.s32 3, %v289_v31  ;;  %s1009_s10 = smov [#allocation8]  }
  0x2c   :  { %v273_v38 = vcvt.s32.f32 %v747_v32  ;;  %v272_v39 = vcvt.s32.f32 %v746_v33  ;;  %s705_s11 = sshll.u32 %s1009_s10, 4  ;;  %s706_s11 = int_to_ptr.vmem [resolvable:$true] %s705_s11 }
  0x2d   :  { %777 = vmatpush3.bf16.msra.mxu0 %v865_v2  ;;  %797 = vmatpush3.bf16.msra.mxu1 %v865_v2  ;;  %s966_s12 = scalar_lea.vmem %s706_s11, 128  ;;  %p971_p2 = scmp.lt.s32.totalorder %s706_s11, %s706_s11 }
  0x2e   :  { %778 = vmatprep.subr.bf16.mxu0 %v999_v0  ;;  %798 = vmatprep.subr.bf16.mxu1 %v999_v0  ;;  %vm275_vm1 = vcmp.gt.f32.partialorder %v273_v38, 0.5  ;;  %vm274_vm2 = vcmp.gt.f32.partialorder %v272_v39, 0.5  ;;  %p967_p1 = scmp.ne.s32.totalorder %s706_s11, %s966_s12  ;;  %p972_p3 = scmp.lt.s32.totalorder %s966_s12, %s966_s12 }
  0x2f   :  { %v277_v51 = vsel %vm275_vm1, 0.0, %v1005_v50  ;;  %v276_v52 = vsel %vm274_vm2, 0.0, %v1005_v50 }
  0x30   :  { %p973_p4 = por %p972_p3, %p971_p2 }
  0x31   :  { %779 = vmatpush3.bf16.msra.mxu0 %v866_v3  ;;  %799 = vmatpush3.bf16.msra.mxu1 %v866_v3 }
  0x32   :  { %780 = vmatprep.subr.bf16.mxu0 %v999_v0  ;;  %800 = vmatprep.subr.bf16.mxu1 %v999_v0  ;;  %p974_p5 = pnand %p973_p4, %p967_p1 }
  0x35   :  { %781 = vmatpush3.bf16.msra.mxu0 %v867_v4  ;;  %801 = vmatpush3.bf16.msra.mxu1 %v867_v4 }
  0x36   :  { %782 = vmatprep.subr.bf16.mxu0 %v999_v0  ;;  %802 = vmatprep.subr.bf16.mxu1 %v999_v0 }
  0x39   :  { %783 = vmatpush3.bf16.msra.mxu0 %v868_v5  ;;  %803 = vmatpush3.bf16.msra.mxu1 %v868_v5 }
  0x3a   :  { %784 = vmatprep.subr.bf16.mxu0 %v999_v0  ;;  %804 = vmatprep.subr.bf16.mxu1 %v999_v0 }
  0x3d   :  { %785 = vmatpush3.bf16.msra.mxu0 %v869_v6  ;;  %805 = vmatpush3.bf16.msra.mxu1 %v869_v6 }
  0x3e   :  { %786 = vmatprep.subr.bf16.mxu0 %v999_v0  ;;  %806 = vmatprep.subr.bf16.mxu1 %v999_v0 }
  0x41   :  { %787 = vmatpush3.bf16.msra.mxu0 %v870_v7  ;;  %807 = vmatpush3.bf16.msra.mxu1 %v870_v7 }
  0x42   :  { %788 = vmatprep.subr.bf16.mxu0 %v999_v0  ;;  %808 = vmatprep.subr.bf16.mxu1 %v999_v0 }
  0x45   :  { %789 = vmatpush3.bf16.msra.mxu0 %v871_v8  ;;  %809 = vmatpush3.bf16.msra.mxu1 %v871_v8 }
  0x46   :  { %814 = vmatprep.subr.bf16.mxu0 %v999_v0  ;;  %820 = vmatprep.subr.bf16.mxu1 %v999_v0 }
  0x48   :  { %791 = vmatmul.mubr.bf16.vlgmr.msra.gmra.mxu0 %v872_v9  ;;  %811 = vmatmul.mubr.bf16.vlgmr.msra.gmra.mxu1 %v873_v10 }
  0x49   :  { %816 = vmatprep.mubr.msk.bf16.mxu0 %vm1000_vm0, %v999_v0  ;;  %822 = vmatprep.mubr.msk.bf16.mxu1 %vm1000_vm0, %v999_v0 }
 0x108   :  { %v167_v13 = vpop.f32.mrf.mxu0  ;;  %v261_v14 = vpop.f32.mrf.mxu1 }
 0x109   :  { %177 = vrot.lane.b32.xlu0 %v167_v13, %s994_s20  ;;  %280 = vperm.xlu1 %856, %v261_v14  }
 0x10a   :  { %v792_v15 = vpop.f32.mrf.mxu0  ;;  %v812_v16 = vpop.f32.mrf.mxu1 }
 0x10c   :  { %v170_v17 = vpop.f32.mrf.mxu0  ;;  %v264_v18 = vpop.f32.mrf.mxu1 }
 0x10d   :  { %v1077_v19 = vpack.c.bf16 %v170_v17, %v167_v13  ;;  %179 = vrot.lane.b32.xlu0 %v170_v17, %s994_s20  ;;  %858 = vset.pattern.permute.xlu1 %v1003_v20 }
 0x10e   :  { %v793_v21 = vpop.f32.mrf.mxu0  ;;  %476 = vperm.xlu1 %858, %v261_v14   ;;  %v813_v22 = vpop.f32.mrf.mxu1 }
 0x10f   :  { %815 = vmatpush3.bf16.msra.mxu0 %v1077_v19  ;;  %821 = vmatpush3.bf16.msra.mxu1 %v1077_v19 }
 0x110   :  { %826 = vmatprep.subr.bf16.mxu0 %v999_v0  ;;  %832 = vmatprep.subr.bf16.mxu1 %v999_v0 }
 0x111   :  { %375 = vperm.xlu0 %857, %v261_v14  }
 0x112   :  { %859 = vset.pattern.permute.xlu1 %v1001_v11 }
 0x113   :  { %285 = vperm.xlu1 %859, %v264_v18  }
 0x115   :  { %862 = vset.pattern.permute.xlu0 %v1003_v20 }
 0x116   :  { %480 = vperm.xlu0 %862, %v264_v18  }
 0x117   :  { %860 = vset.pattern.permute.xlu1 %v1002_v12 }
 0x118   :  { %379 = vperm.xlu1 %860, %v264_v18  }
 0x11c   :  { %861 = vset.pattern.permute.xlu1 %v1004_v23 }
 0x11d   :  { %577 = vperm.xlu1 %861, %v261_v14  }
 0x121   :  { %581 = vperm.xlu1 %861, %v264_v18  }
 0x17b   :  { %v178_v24 = vpop.permute.xlu0 %177 }
 0x17c   :  { %183 = vxpose.xlu0.b32.start [1/2] (short) (narrow) %v178_v24, 8 }
 0x17f   :  { %v180_v25 = vpop.permute.xlu0 %179 }
 0x180   :  { %184 = vxpose.xlu0.b32.end [2/2] (short) (narrow) %v180_v25, 8 }
 0x184   :  { %v281_v26 = vpop.permute.xlu1 %280 }
 0x189   :  { %v477_v28 = vpop.permute.xlu1 %476 }
 0x18c   :  { %v376_v29 = vpop.permute.xlu0 %375 }
 0x18e   :  { %v286_v34 = vpop.permute.xlu1 %285 }
 0x191   :  { %v481_v35 = vpop.permute.xlu0 %480 }
 0x193   :  { %v380_v44 = vpop.permute.xlu1 %379 }
 0x198   :  { %v578_v8 = vpop.permute.xlu1 %577 }
 0x19c   :  { %v582_v14 = vpop.permute.xlu1 %581 }
 0x1a9   :  { %863 = vset.pattern.permute.xlu0 %v1004_v23 }
 0x1f8   :  { %v199_v41 = vpop.trf.xlu0 }
 0x1f9   :  { %v291_v42 = vrot.slane %v199_v41, %v290_v36  ;;  %v385_v43 = vrot.slane %v199_v41, %v384_v37  ;;  %v486_v45 = vrot.slane %v199_v41, %v485_v40  ;;  %v587_v5 = vrot.slane %v199_v41, %v586_v55 }
 0x1fb   :  { %v292_v46 = vadd.f32 %v291_v42, %v281_v26  ;;  %v293_v47 = vadd.f32 %v291_v42, %v286_v34  ;;  %v386_v48 = vadd.f32 %v385_v43, %v376_v29  ;;  %v387_v49 = vadd.f32 %v385_v43, %v380_v44 }
 0x1fc   :  { %v487_v57 = vadd.f32 %v486_v45, %v477_v28  ;;  %v488_v4 = vadd.f32 %v486_v45, %v481_v35  ;;  %v588_v11 = vadd.f32 %v587_v5, %v578_v8  ;;  %v589_v17 = vadd.f32 %v587_v5, %v582_v14 }
 0x1fd   :  { %vm295_vm3 = vcmp.gt.f32.partialorder %v293_v47, 0.0  ;;  %v297_v53 = vmul.f32 0.2, %v293_v47  ;;  %vm294_vm4 = vcmp.gt.f32.partialorder %v292_v46, 0.0  ;;  %v296_v54 = vmul.f32 0.2, %v292_v46 }
 0x1fe   :  { %vm388_vm6 = vcmp.gt.f32.partialorder %v386_v48, 0.0  ;;  %v390_v56 = vmul.f32 0.2, %v386_v48  ;;  %v391_v60 = vmul.f32 0.2, %v387_v49  ;;  %vm389_vm7 = vcmp.gt.f32.partialorder %v387_v49, 0.0 }
 0x1ff   :  { %v299_v58 = vsel %vm295_vm3, %v293_v47, %v297_v53  ;;  %v298_v59 = vsel %vm294_vm4, %v292_v46, %v296_v54  ;;  %v491_v7 = vmul.f32 0.2, %v487_v57  ;;  %vm489_vm8 = vcmp.gt.f32.partialorder %v487_v57, 0.0 }
 0x200   :  { %v301_v61 = vadd.f32 %v299_v58, %v277_v51  ;;  %v300_v62 = vadd.f32 %v298_v59, %v276_v52  ;;  %v392_v63 = vsel %vm388_vm6, %v386_v48, %v390_v56  ;;  %v393_v6 = vsel %vm389_vm7, %v387_v49, %v391_v60 }
 0x201   :  { %v394_v3 = vadd.f32 %v392_v63, %v276_v52  ;;  %v395_v10 = vadd.f32 %v393_v6, %v277_v51  ;;  %v493_v12 = vsel %vm489_vm8, %v487_v57, %v491_v7  ;;  %v492_v13 = vmul.f32 0.2, %v488_v4 }
 0x202   :  { %v306_v1 = vsel %vm302_vm5, %v301_v61, -inf  ;;  %v303_v2 = vsel %vm302_vm5, %v300_v62, -inf  ;;  %vm490_vm9 = vcmp.gt.f32.partialorder %v488_v4, 0.0  ;;  %v495_v16 = vadd.f32 %v493_v12, %v276_v52 }
 0x203   :  { %307 = vmax.xlane.f32.xlu0 %v306_v1  ;;  %304 = vmax.xlane.f32.xlu1 %v303_v2  ;;  %v396_v9 = vsel %vm302_vm5, %v394_v3, -inf  ;;  %v399_v15 = vsel %vm302_vm5, %v395_v10, -inf  ;;  %v494_v18 = vsel %vm490_vm9, %v488_v4, %v492_v13  ;;  %v592_v20 = vmul.f32 0.2, %v588_v11 }
 0x204   :  { %vm590_vm10 = vcmp.gt.f32.partialorder %v588_v11, 0.0  ;;  %v497_v21 = vsel %vm302_vm5, %v495_v16, -inf  ;;  %v496_v22 = vadd.f32 %v494_v18, %v277_v51  ;;  %v593_v24 = vmul.f32 0.2, %v589_v17 }
 0x205   :  { %v594_v23 = vsel %vm590_vm10, %v588_v11, %v592_v20  ;;  %vm591_vm11 = vcmp.gt.f32.partialorder %v589_v17, 0.0 }
 0x206   :  { %v500_v25 = vsel %vm302_vm5, %v496_v22, -inf  ;;  %v596_v26 = vadd.f32 %v594_v23, %v276_v52  ;;  %v595_v27 = vsel %vm591_vm11, %v589_v17, %v593_v24 }
 0x207   :  { %397 = vmax.xlane.f32.xlu1 %v396_v9  ;;  %v597_v29 = vadd.f32 %v595_v27, %v277_v51 }
 0x208   :  { %v598_v28 = vsel %vm302_vm5, %v596_v26, -inf }
 0x209   :  { %v601_v30 = vsel %vm302_vm5, %v597_v29, -inf }
 0x20b   :  { %400 = vmax.xlane.f32.xlu1 %v399_v15 }
 0x20f   :  { %498 = vmax.xlane.f32.xlu1 %v497_v21 }
 0x213   :  { %501 = vmax.xlane.f32.xlu1 %v500_v25 }
 0x217   :  { %599 = vmax.xlane.f32.xlu1 %v598_v28 }
 0x21b   :  { %602 = vmax.xlane.f32.xlu1 %v601_v30 }
 0x28c   :  { %v308_v31 = vpop.xlane.xlu0 %307  ;;  %v305_v32 = vpop.xlane.xlu1 %304 }
 0x28d   :  { %v310_v33 = vsub.f32 %v301_v61, %v308_v31  ;;  %v309_v34 = vsub.f32 %v300_v62, %v305_v32 }
 0x28f   :  { %v311_v35 = vmul.f32 1.442695, %v309_v34  ;;  %v313_v36 = vmul.f32 1.442695, %v310_v33 }
 0x290   :  { %v398_v37 = vpop.xlane.xlu1 %397 }
 0x291   :  { %v402_v38 = vsub.f32 %v394_v3, %v398_v37  ;;  %874 = vpow2.f32 %v311_v35 }
 0x292   :  { %876 = vpow2.f32 %v313_v36 }
 0x293   :  { %v404_v39 = vmul.f32 1.442695, %v402_v38 }
 0x294   :  { %v401_v40 = vpop.xlane.xlu1 %400 }
 0x295   :  { %v403_v41 = vsub.f32 %v395_v10, %v401_v40  ;;  %878 = vpow2.f32 %v404_v39 }
 0x297   :  { %v406_v42 = vmul.f32 1.442695, %v403_v41 }
 0x298   :  { %v499_v43 = vpop.xlane.xlu1 %498 }
 0x299   :  { %v503_v44 = vsub.f32 %v495_v16, %v499_v43  ;;  %880 = vpow2.f32 %v406_v42 }
 0x29b   :  { %v505_v45 = vmul.f32 1.442695, %v503_v44 }
 0x29c   :  { %v502_v46 = vpop.xlane.xlu1 %501 }
 0x29d   :  { %v504_v47 = vsub.f32 %v496_v22, %v502_v46  ;;  %882 = vpow2.f32 %v505_v45 }
 0x29e   :  { %v875_v48 = vpop.eup %874 }
 0x29f   :  { %v507_v49 = vmul.f32 1.442695, %v504_v47  ;;  %v315_v50 = vsel %vm302_vm5, %v875_v48, 0.0  ;;  %v877_v52 = vpop.eup %876 }
 0x2a0   :  { %v600_v51 = vpop.xlane.xlu1 %599  ;;  %316 = vadd.xlane.f32.xlu1 %v315_v50  ;;  %v318_v55 = vsel %vm302_vm5, %v877_v52, 0.0 }
 0x2a1   :  { %884 = vpow2.f32 %v507_v49  ;;  %v604_v53 = vsub.f32 %v596_v26, %v600_v51 }
 0x2a2   :  { %v879_v57 = vpop.eup %878 }
 0x2a3   :  { %v606_v54 = vmul.f32 1.442695, %v604_v53  ;;  %v408_v60 = vsel %vm302_vm5, %v879_v57, 0.0 }
 0x2a4   :  { %v603_v56 = vpop.xlane.xlu1 %602  ;;  %319 = vadd.xlane.f32.xlu1 %v318_v55 }
 0x2a5   :  { %886 = vpow2.f32 %v606_v54  ;;  %v605_v58 = vsub.f32 %v597_v29, %v603_v56 }
 0x2a6   :  { %v881_v61 = vpop.eup %880 }
 0x2a7   :  { %v608_v59 = vmul.f32 1.442695, %v605_v58  ;;  %v411_v62 = vsel %vm302_vm5, %v881_v61, 0.0 }
 0x2a8   :  { %409 = vadd.xlane.f32.xlu1 %v408_v60 }
 0x2a9   :  { %888 = vpow2.f32 %v608_v59 }
 0x2aa   :  { %v883_v63 = vpop.eup %882 }
 0x2ab   :  { %v509_v3 = vsel %vm302_vm5, %v883_v63, 0.0 }
 0x2ac   :  { %412 = vadd.xlane.f32.xlu1 %v411_v62 }
 0x2ae   :  { %v885_v1 = vpop.eup %884 }
 0x2af   :  { %v512_v2 = vsel %vm302_vm5, %v885_v1, 0.0 }
 0x2b0   :  { %513 = vadd.xlane.f32.xlu0 %v512_v2  ;;  %510 = vadd.xlane.f32.xlu1 %v509_v3 }
 0x2b2   :  { %v887_v4 = vpop.eup %886 }
 0x2b3   :  { %v610_v5 = vsel %vm302_vm5, %v887_v4, 0.0 }
 0x2b4   :  { %611 = vadd.xlane.f32.xlu1 %v610_v5 }
 0x2b6   :  { %v889_v6 = vpop.eup %888 }
 0x2b7   :  { %v613_v7 = vsel %vm302_vm5, %v889_v6, 0.0 }
 0x2b8   :  { %614 = vadd.xlane.f32.xlu0 %v613_v7 }
 0x329   :  { %v317_v8 = vpop.xlane.xlu1 %316 }
 0x32a   :  { %v321_v9 = vmul.f32 4.0, %v317_v8 }
 0x32c   :  { %890 = vrcp.f32 %v321_v9 }
 0x32d   :  { %v320_v10 = vpop.xlane.xlu1 %319 }
 0x32e   :  { %v322_v11 = vmul.f32 4.0, %v320_v10 }
 0x330   :  { %892 = vrcp.f32 %v322_v11 }
 0x331   :  { %v410_v12 = vpop.xlane.xlu1 %409 }
 0x332   :  { %v414_v13 = vmul.f32 4.0, %v410_v12 }
 0x334   :  { %894 = vrcp.f32 %v414_v13 }
 0x335   :  { %v413_v14 = vpop.xlane.xlu1 %412 }
 0x336   :  { %v415_v15 = vmul.f32 4.0, %v413_v14 }
 0x338   :  { %896 = vrcp.f32 %v415_v15 }
 0x339   :  { %v514_v16 = vpop.xlane.xlu0 %513  ;;  %v511_v18 = vpop.xlane.xlu1 %510 }
 0x33a   :  { %v516_v17 = vmul.f32 4.0, %v514_v16  ;;  %v515_v20 = vmul.f32 4.0, %v511_v18  ;;  %v891_v21 = vpop.eup %890 }
 0x33b   :  { %v325_v25 = vmul.f32 %v891_v21, %v875_v48 }
 0x33c   :  { %898 = vrcp.f32 %v516_v17 }
 0x33d   :  { %900 = vrcp.f32 %v515_v20  ;;  %v893_v22 = vpop.eup %892  ;;  %v612_v23 = vpop.xlane.xlu1 %611 }
 0x33e   :  { %v616_v24 = vmul.f32 4.0, %v612_v23  ;;  %v326_v26 = vmul.f32 %v893_v22, %v877_v52 }
 0x340   :  { %v327_v28 = vpack.c.bf16 %v326_v26, %v325_v25  ;;  %902 = vrcp.f32 %v616_v24 }
 0x341   :  { %v615_v27 = vpop.xlane.xlu0 %614  ;;  %v895_v30 = vpop.eup %894 }
 0x342   :  { %v617_v29 = vmul.f32 4.0, %v615_v27  ;;  %817 = vmatmul.mubr.msk.bf16.vlgmr.msra.gmra.mxu0 %vm302_vm5, %v327_v28  ;;  %v418_v32 = vmul.f32 %v895_v30, %v879_v57 }
 0x343   :  { %827 = vmatpush3.bf16.msra.mxu0 %v1077_v19  ;;  %828 = vmatprep.mubr.msk.bf16.mxu0 %vm1000_vm0, %v999_v0 }
 0x344   :  { %904 = vrcp.f32 %v617_v29 }
 0x345   :  { %v897_v31 = vpop.eup %896 }
 0x346   :  { %v419_v33 = vmul.f32 %v897_v31, %v881_v61 }
 0x348   :  { %v420_v35 = vpack.c.bf16 %v419_v33, %v418_v32 }
 0x349   :  { %v899_v34 = vpop.eup %898 }
 0x34a   :  { %v901_v36 = vpop.eup %900  ;;  %v520_v37 = vmul.f32 %v899_v34, %v885_v1  ;;  %823 = vmatmul.mubr.msk.bf16.vlgmr.msra.gmra.mxu1 %vm302_vm5, %v420_v35 }
 0x34b   :  { %v519_v38 = vmul.f32 %v901_v36, %v883_v63  ;;  %833 = vmatpush3.bf16.msra.mxu1 %v1077_v19  ;;  %834 = vmatprep.mubr.msk.bf16.mxu1 %vm1000_vm0, %v999_v0 }
 0x34d   :  { %v521_v39 = vpack.c.bf16 %v520_v37, %v519_v38  ;;  %v903_v40 = vpop.eup %902 }
 0x34e   :  { %v620_v42 = vmul.f32 %v903_v40, %v887_v4 }
 0x34f   :  { %829 = vmatmul.mubr.msk.bf16.vlgmr.msra.gmra.mxu0 %vm302_vm5, %v521_v39 }
 0x351   :  { %v905_v41 = vpop.eup %904 }
 0x352   :  { %v621_v43 = vmul.f32 %v905_v41, %v889_v6  ;;  %v734_v6 = vld [vmem:[%s1124_s3] ss:$0 sm:$0xff] }
 0x354   :  { %v622_v44 = vpack.c.bf16 %v621_v43, %v620_v42 }
 0x356   :  { %835 = vmatmul.mubr.msk.bf16.vlgmr.msra.gmra.mxu1 %vm302_vm5, %v622_v44 }
 0x402   :  { %v365_v45 = vpop.f32.mrf.mxu0 }
 0x404   :  { %v818_v46 = vpop.f32.mrf.mxu0 }
 0x406   :  { %v368_v47 = vpop.f32.mrf.mxu0 }
 0x408   :  { %v819_v48 = vpop.f32.mrf.mxu0 }
 0x40a   :  { %v458_v49 = vpop.f32.mrf.mxu1 }
 0x40b   :  { %467 = vrot.lane.b32.xlu1 %v458_v49, %s1006_s0 }
 0x40c   :  { %v824_v19 = vpop.f32.mrf.mxu1 }
 0x40e   :  { %v461_v50 = vpop.f32.mrf.mxu1 }
 0x40f   :  { %v559_v0 = vpop.f32.mrf.mxu0  ;;  %469 = vrot.lane.b32.xlu0 %v461_v50, %s1006_s0 }
 0x410   :  { %568 = vrot.lane.b32.xlu1 %v559_v0, %s1007_s2  ;;  %v825_v51 = vpop.f32.mrf.mxu1 }
 0x411   :  { %v830_v52 = vpop.f32.mrf.mxu0 }
 0x413   :  { %v562_v53 = vpop.f32.mrf.mxu0 }
 0x414   :  { %570 = vrot.lane.b32.xlu1 %v562_v53, %s1007_s2 }
 0x415   :  { %v831_v54 = vpop.f32.mrf.mxu0 }
 0x416   :  { %v660_v55 = vpop.f32.mrf.mxu1 }
 0x417   :  { %669 = vrot.lane.b32.xlu0 %v660_v55, %s1008_s7 }
 0x418   :  { %v836_v56 = vpop.f32.mrf.mxu1 }
 0x41a   :  { %v663_v57 = vpop.f32.mrf.mxu1 }
 0x41b   :  { %671 = vrot.lane.b32.xlu1 %v663_v57, %s1008_s7 }
 0x41c   :  { %v837_v58 = vpop.f32.mrf.mxu1 }
 0x47d   :  { %v468_v59 = vpop.permute.xlu1 %467 }
 0x47e   :  { %v473_v62 = vadd.f32 %v468_v59, %v365_v45 }
 0x481   :  { %v470_v61 = vpop.permute.xlu0 %469 }
 0x482   :  { %v569_v60 = vpop.permute.xlu1 %568  ;;  %v474_v3 = vadd.f32 %v470_v61, %v368_v47 }
 0x483   :  { %v574_v63 = vadd.f32 %v569_v60, %v473_v62 }
 0x486   :  { %v571_v1 = vpop.permute.xlu1 %570 }
 0x487   :  { %v575_v5 = vadd.f32 %v571_v1, %v474_v3 }
 0x489   :  { %v670_v2 = vpop.permute.xlu0 %669 }
 0x48a   :  { %v675_v4 = vadd.f32 %v670_v2, %v574_v63 }
 0x48c   :  { %v677_v7 = vsel %vm302_vm5, %v675_v4, 0.0 }
 0x48d   :  { %v672_v8 = vpop.permute.xlu1 %671  ;;  %v686_v10 = vadd.f32 %v734_v6, %v677_v7 }
 0x48e   :  { %v676_v9 = vadd.f32 %v672_v8, %v575_v5 }
 0x48f   :  { %v688_v13 = vmax.f32 %v686_v10, 0.0 }
 0x490   :  { %v678_v11 = vsel %vm302_vm5, %v676_v9, 0.0 }
 0x491   :  { %v687_v12 = vadd.f32 %v734_v6, %v678_v11 }
 0x493   :  { %v689_v14 = vmax.f32 %v687_v12, 0.0 }
 0x495   :  { %v742_v15 = vpack.c.bf16 %v689_v14, %v688_v13 }
 0x497   :  { %743 = vst [vmem:[#allocation8] sm:$0xff] %v742_v15  }
 0x498   :  { %977 = shalt.err (!%p974_p5)
}
 0x499   :  { %711 = dma.vmem_to_hbm [thread:$0]  %s706_s11, 128, %s1125_s4, [#allocation4], %s994_s20, %s994_s20, %s995_s21  }
 0x49a   :  { %990 = dma.done.wait [#allocation4], 128  }
 0x49b   :  { %991 = vsyncadd [#allocation4], 4294967168 }
 0x49c   :  { %715 = vsyncpa [#allocation3], 1 }
 0x49d   :  { %716 = vsyncpa [#allocation6], 1 }
 0x49e   :  { %717 = vsyncpa [#allocation4], 1 }

</bundles_post_ra>
